<compile_context>
chip_gen: v7x
topology: tpu7x:2x2x1
jax: 0.10.0
libtpu: 0.0.40
codegen_flags: <defaults>
</compile_context>

<pallas_src>
import functools

import jax
import jax.numpy as jnp
from jax import lax
from jax.experimental import pallas as pl
from jax.experimental.pallas import tpu as pltpu

_BN_EPS = 1e-5


def _double_conv_kernel(x_ref, mask_ref, w1_ref, g1_ref, b1_ref,
                        w2_ref, g2_ref, b2_ref, o_ref, *, width):
    """Fused DoubleConv on channel-major, lane-dense activations.

    x_ref   : (Cin,  M) f32 input, M = N*H*W, flat index m = n*H*W + h*W + w
    mask_ref: (9,    M) f32 border-validity mask per 3x3 tap, t = ky*3 + kx
    w*_ref  : (Cout, 9*Cin) bf16 tap-major weights (col index = t*Cin + i)
    g*/b*   : (Cout, 1) f32 BatchNorm gamma/beta (broadcast over lanes)
    o_ref   : (Cout, M) f32 output (lane-dense: last dim multiple of 128)
    """
    m = x_ref.shape[-1]
    inv_m = 1.0 / float(m)
    masks = mask_ref[...]                      # loaded once, reused by both convs
    # Tap lane-shifts, t = ky*3 + kx  <->  (dy, dx) = (ky-1, kx-1).
    shifts = [dy * width + dx for dy in (-1, 0, 1) for dx in (-1, 0, 1)]

    def im2col(x):
        # x: (C, M) f32 -> (9*C, M) bf16.  Per tap: lane roll (XLU) + border
        # mask multiply (VPU).  Wrapped lanes are always masked positions.
        cols = []
        for t, s in enumerate(shifts):
            shifted = x if s == 0 else pltpu.roll(x, (-s) % m, axis=1)
            cols.append(shifted * masks[t:t + 1, :])
        return jnp.concatenate(cols, axis=0).astype(jnp.bfloat16)

    def conv3x3(x, w2d):
        # Single MXU dot: (Cout, 9*Cin) @ (9*Cin, M) -> (Cout, M), f32 acc.
        return jnp.dot(w2d, im2col(x), preferred_element_type=jnp.float32)

    def bn_relu(y, gamma, beta):
        # Training-mode BatchNorm2d over all N*H*W lanes, biased variance,
        # two-pass (mean, then centered variance) in f32; fused ReLU.
        mean = jnp.sum(y, axis=-1, keepdims=True) * inv_m
        yc = y - mean
        var = jnp.sum(yc * yc, axis=-1, keepdims=True) * inv_m
        scale = lax.rsqrt(var + _BN_EPS) * gamma
        return jnp.maximum(yc * scale + beta, 0.0)

    a1 = bn_relu(conv3x3(x_ref[...], w1_ref[...]), g1_ref[...], b1_ref[...])
    y2 = conv3x3(a1, w2_ref[...])
    o_ref[...] = bn_relu(y2, g2_ref[...], b2_ref[...]).astype(o_ref.dtype)


@jax.jit
def double_conv_forward(x_nchw, params):
    """Equivalent of DoubleConv.forward on an NCHW input (training-mode BN)."""
    w1, g1, b1, w2, g2, b2 = params
    n, cin, h, w = x_nchw.shape
    cmid, cout = w1.shape[0], w2.shape[0]
    m = n * h * w
    f32, bf16 = jnp.float32, jnp.bfloat16

    # Layout plumbing (tiny here, done once per call inside jit):
    #   NCHW -> channel-major lane-dense (Cin, N*H*W)
    #   OIHW -> tap-major (Cout, 9*Cin) matching im2col row order t*Cin + i.
    # TODO(synk): for real U-Net sizes keep activations channel-major across
    # consecutive blocks (or fold this transpose into the consumer) instead of
    # paying an HBM round trip per call.
    x_cm = jnp.transpose(x_nchw, (1, 0, 2, 3)).reshape(cin, m).astype(f32)
    w1_2d = jnp.transpose(w1, (0, 2, 3, 1)).reshape(cmid, 9 * cin).astype(bf16)
    w2_2d = jnp.transpose(w2, (0, 2, 3, 1)).reshape(cout, 9 * cmid).astype(bf16)

    # 3x3 "same"-padding border masks per tap (shared by both convs),
    # precomputed so the kernel never does per-lane integer // and %.
    pos = jnp.arange(m, dtype=jnp.int32)
    hh = (pos // w) % h
    ww = pos % w
    mask9 = jnp.stack(
        [((hh + dy >= 0) & (hh + dy < h) & (ww + dx >= 0) & (ww + dx < w))
         for dy in (-1, 0, 1) for dx in (-1, 0, 1)]).astype(f32)

    vmem = pltpu.MemorySpace.VMEM
    # All operands are tiny (<100 KB), so a single VMEM-resident block (no
    # grid, no pipelining) is the right tiling at these shapes.
    # TODO(synk): for real U-Net sizes, tile M over the batch axis (halo-free:
    # image borders are already masked) with dimension_semantics=("parallel",)
    # so v7x's second TensorCore is used, size the (9*C, tile_M) im2col
    # staging + tiles for v7x's 64 MiB VMEM (set vmem_limit_bytes), pad M up
    # to a multiple of 128 (adjusting inv_m), and restructure BN as a global
    # accumulate-then-finalize so batch statistics stay exact across tiles.
    out2d = pl.pallas_call(
        functools.partial(_double_conv_kernel, width=w),
        out_shape=jax.ShapeDtypeStruct((cout, m), f32),
        in_specs=[pl.BlockSpec(memory_space=vmem)] * 8,
        out_specs=pl.BlockSpec(memory_space=vmem),
    )(x_cm, mask9, w1_2d,
      g1.reshape(cmid, 1).astype(f32), b1.reshape(cmid, 1).astype(f32),
      w2_2d,
      g2.reshape(cout, 1).astype(f32), b2.reshape(cout, 1).astype(f32))

    return jnp.transpose(out2d.reshape(cout, n, h, w), (1, 0, 2, 3))


def _reference(x_nchw, params):
    """Pure-JAX reference mirroring the PyTorch module (training-mode BN)."""
    w1, g1, b1, w2, g2, b2 = params

    def block(x, wgt, g, b):
        y = lax.conv_general_dilated(
            x, wgt, window_strides=(1, 1), padding=((1, 1), (1, 1)),
            dimension_numbers=("NCHW", "OIHW", "NCHW"),
            precision=lax.Precision.HIGHEST)
        mean = jnp.mean(y, axis=(0, 2, 3), keepdims=True)
        var = jnp.mean(jnp.square(y - mean), axis=(0, 2, 3), keepdims=True)
        y = (y - mean) * lax.rsqrt(var + _BN_EPS)
        y = y * g.reshape(1, -1, 1, 1) + b.reshape(1, -1, 1, 1)
        return jnp.maximum(y, 0.0)

    return block(block(x_nchw, w1, g1, b1), w2, g2, b2)


if __name__ == "__main__":
    key = jax.random.PRNGKey(0)
    n, cin, h, w = 2, 4, 16, 16
    cmid = cout = 8   # mid_channels defaults to out_channels

    ks = jax.random.split(key, 7)
    x = jax.random.normal(ks[0], (n, cin, h, w), jnp.float32)
    # Deterministic synthetic parameters (shapes match nn.Conv2d / nn.BatchNorm2d).
    w1 = jax.random.normal(ks[1], (cmid, cin, 3, 3), jnp.float32) / (3.0 * (cin ** 0.5))
    g1 = 1.0 + 0.1 * jax.random.normal(ks[2], (cmid,), jnp.float32)
    b1 = 0.1 * jax.random.normal(ks[3], (cmid,), jnp.float32)
    w2 = jax.random.normal(ks[4], (cout, cmid, 3, 3), jnp.float32) / (3.0 * (cmid ** 0.5))
    g2 = 1.0 + 0.1 * jax.random.normal(ks[5], (cout,), jnp.float32)
    b2 = 0.1 * jax.random.normal(ks[6], (cout,), jnp.float32)
    params = (w1, g1, b1, w2, g2, b2)

    out = double_conv_forward(x, params)
    out = jax.block_until_ready(out)

    ref = _reference(x, params)
    assert out.shape == (n, cout, h, w), out.shape
    err = float(jnp.max(jnp.abs(out - ref)))
    assert jnp.allclose(out, ref, atol=3e-2, rtol=3e-2), f"max abs err {err}"
    print("KERNEL_OK")
</pallas_src>

<mosaic_0001>
module attributes {stable_mosaic.version = 11 : i64} {
  func.func @_double_conv_kernel(%arg0: memref<4x512xf32, #tpu.memory_space<vmem>>, %arg1: memref<9x512xf32, #tpu.memory_space<vmem>>, %arg2: memref<8x36xbf16, #tpu.memory_space<vmem>>, %arg3: memref<8x1xf32, #tpu.memory_space<vmem>>, %arg4: memref<8x1xf32, #tpu.memory_space<vmem>>, %arg5: memref<8x72xbf16, #tpu.memory_space<vmem>>, %arg6: memref<8x1xf32, #tpu.memory_space<vmem>>, %arg7: memref<8x1xf32, #tpu.memory_space<vmem>>, %arg8: memref<8x512xf32, #tpu.memory_space<vmem>>) attributes {dimension_semantics = [], scalar_prefetch = 0 : i64, scratch_operands = 0 : i64, tpu.core_type = #tpu.core_type<tc>} {
    %c0 = arith.constant 0 : index
    %c0_0 = arith.constant 0 : index
    %0 = vector.load %arg1[%c0, %c0_0] : memref<9x512xf32, #tpu.memory_space<vmem>>, vector<9x512xf32>
    %c0_1 = arith.constant 0 : index
    %c0_2 = arith.constant 0 : index
    %1 = vector.load %arg0[%c0_1, %c0_2] : memref<4x512xf32, #tpu.memory_space<vmem>>, vector<4x512xf32>
    %c0_3 = arith.constant 0 : index
    %c0_4 = arith.constant 0 : index
    %2 = vector.load %arg2[%c0_3, %c0_4] : memref<8x36xbf16, #tpu.memory_space<vmem>>, vector<8x36xbf16>
    %c17_i32 = arith.constant 17 : i32
    %3 = tpu.dynamic_rotate %1 by %c17_i32 dim 1 : vector<4x512xf32>, i32 -> vector<4x512xf32>
    %4 = vector.extract_strided_slice %0 {offsets = [0, 0], sizes = [1, 512], strides = [1, 1]} : vector<9x512xf32> to vector<1x512xf32>
    %5 = vector.broadcast %4 : vector<1x512xf32> to vector<4x512xf32>
    %6 = arith.mulf %3, %5 : vector<4x512xf32>
    %c16_i32 = arith.constant 16 : i32
    %7 = tpu.dynamic_rotate %1 by %c16_i32 dim 1 : vector<4x512xf32>, i32 -> vector<4x512xf32>
    %8 = vector.extract_strided_slice %0 {offsets = [1, 0], sizes = [1, 512], strides = [1, 1]} : vector<9x512xf32> to vector<1x512xf32>
    %9 = vector.broadcast %8 : vector<1x512xf32> to vector<4x512xf32>
    %10 = arith.mulf %7, %9 : vector<4x512xf32>
    %c15_i32 = arith.constant 15 : i32
    %11 = tpu.dynamic_rotate %1 by %c15_i32 dim 1 : vector<4x512xf32>, i32 -> vector<4x512xf32>
    %12 = vector.extract_strided_slice %0 {offsets = [2, 0], sizes = [1, 512], strides = [1, 1]} : vector<9x512xf32> to vector<1x512xf32>
    %13 = vector.broadcast %12 : vector<1x512xf32> to vector<4x512xf32>
    %14 = arith.mulf %11, %13 : vector<4x512xf32>
    %c1_i32 = arith.constant 1 : i32
    %15 = tpu.dynamic_rotate %1 by %c1_i32 dim 1 : vector<4x512xf32>, i32 -> vector<4x512xf32>
    %16 = vector.extract_strided_slice %0 {offsets = [3, 0], sizes = [1, 512], strides = [1, 1]} : vector<9x512xf32> to vector<1x512xf32>
    %17 = vector.broadcast %16 : vector<1x512xf32> to vector<4x512xf32>
    %18 = arith.mulf %15, %17 : vector<4x512xf32>
    %19 = vector.extract_strided_slice %0 {offsets = [4, 0], sizes = [1, 512], strides = [1, 1]} : vector<9x512xf32> to vector<1x512xf32>
    %20 = vector.broadcast %19 : vector<1x512xf32> to vector<4x512xf32>
    %21 = arith.mulf %1, %20 : vector<4x512xf32>
    %c511_i32 = arith.constant 511 : i32
    %22 = tpu.dynamic_rotate %1 by %c511_i32 dim 1 : vector<4x512xf32>, i32 -> vector<4x512xf32>
    %23 = vector.extract_strided_slice %0 {offsets = [5, 0], sizes = [1, 512], strides = [1, 1]} : vector<9x512xf32> to vector<1x512xf32>
    %24 = vector.broadcast %23 : vector<1x512xf32> to vector<4x512xf32>
    %25 = arith.mulf %22, %24 : vector<4x512xf32>
    %c497_i32 = arith.constant 497 : i32
    %26 = tpu.dynamic_rotate %1 by %c497_i32 dim 1 : vector<4x512xf32>, i32 -> vector<4x512xf32>
    %27 = vector.extract_strided_slice %0 {offsets = [6, 0], sizes = [1, 512], strides = [1, 1]} : vector<9x512xf32> to vector<1x512xf32>
    %28 = vector.broadcast %27 : vector<1x512xf32> to vector<4x512xf32>
    %29 = arith.mulf %26, %28 : vector<4x512xf32>
    %c496_i32 = arith.constant 496 : i32
    %30 = tpu.dynamic_rotate %1 by %c496_i32 dim 1 : vector<4x512xf32>, i32 -> vector<4x512xf32>
    %31 = vector.extract_strided_slice %0 {offsets = [7, 0], sizes = [1, 512], strides = [1, 1]} : vector<9x512xf32> to vector<1x512xf32>
    %32 = vector.broadcast %31 : vector<1x512xf32> to vector<4x512xf32>
    %33 = arith.mulf %30, %32 : vector<4x512xf32>
    %c495_i32 = arith.constant 495 : i32
    %34 = tpu.dynamic_rotate %1 by %c495_i32 dim 1 : vector<4x512xf32>, i32 -> vector<4x512xf32>
    %35 = vector.extract_strided_slice %0 {offsets = [8, 0], sizes = [1, 512], strides = [1, 1]} : vector<9x512xf32> to vector<1x512xf32>
    %36 = vector.broadcast %35 : vector<1x512xf32> to vector<4x512xf32>
    %37 = arith.mulf %34, %36 : vector<4x512xf32>
    %38 = tpu.concatenate %6, %10, %14, %18, %21, %25, %29, %33, %37 in 0 : vector<4x512xf32>, vector<4x512xf32>, vector<4x512xf32>, vector<4x512xf32>, vector<4x512xf32>, vector<4x512xf32>, vector<4x512xf32>, vector<4x512xf32>, vector<4x512xf32> -> vector<36x512xf32>
    %39 = arith.truncf %38 : vector<36x512xf32> to vector<36x512xbf16>
    %cst = arith.constant dense<0.000000e+00> : vector<8x512xf32>
    %40 = tpu.matmul %2, %39, %cst {dimension_numbers = #tpu.dot_dimension_numbers<[1], [0], [0], [1], [0, 0, 1, 1], [], []>} : vector<8x36xbf16>, vector<36x512xbf16>, vector<8x512xf32> -> vector<8x512xf32>
    %c0_5 = arith.constant 0 : index
    %c0_6 = arith.constant 0 : index
    %41 = vector.load %arg3[%c0_5, %c0_6] : memref<8x1xf32, #tpu.memory_space<vmem>>, vector<8x1xf32>
    %c0_7 = arith.constant 0 : index
    %c0_8 = arith.constant 0 : index
    %42 = vector.load %arg4[%c0_7, %c0_8] : memref<8x1xf32, #tpu.memory_space<vmem>>, vector<8x1xf32>
    %cst_9 = arith.constant dense<0.000000e+00> : vector<8xf32>
    %43 = vector.multi_reduction <add>, %40, %cst_9 [1] : vector<8x512xf32> to vector<8xf32>
    %44 = vector.shape_cast %43 : vector<8xf32> to vector<8x1xf32>
    %cst_10 = arith.constant 0.001953125 : f32
    %45 = vector.broadcast %cst_10 : f32 to vector<8x1xf32>
    %46 = arith.mulf %44, %45 : vector<8x1xf32>
    %47 = vector.broadcast %46 : vector<8x1xf32> to vector<8x512xf32>
    %48 = arith.subf %40, %47 : vector<8x512xf32>
    %49 = arith.mulf %48, %48 : vector<8x512xf32>
    %cst_11 = arith.constant dense<0.000000e+00> : vector<8xf32>
    %50 = vector.multi_reduction <add>, %49, %cst_11 [1] : vector<8x512xf32> to vector<8xf32>
    %51 = vector.shape_cast %50 : vector<8xf32> to vector<8x1xf32>
    %cst_12 = arith.constant 0.001953125 : f32
    %52 = vector.broadcast %cst_12 : f32 to vector<8x1xf32>
    %53 = arith.mulf %51, %52 : vector<8x1xf32>
    %cst_13 = arith.constant 9.99999974E-6 : f32
    %54 = vector.broadcast %cst_13 : f32 to vector<8x1xf32>
    %55 = arith.addf %53, %54 : vector<8x1xf32>
    %56 = math.rsqrt %55 : vector<8x1xf32>
    %57 = arith.mulf %56, %41 : vector<8x1xf32>
    %58 = vector.broadcast %57 : vector<8x1xf32> to vector<8x512xf32>
    %59 = arith.mulf %48, %58 : vector<8x512xf32>
    %60 = vector.broadcast %42 : vector<8x1xf32> to vector<8x512xf32>
    %61 = arith.addf %59, %60 : vector<8x512xf32>
    %cst_14 = arith.constant 0.000000e+00 : f32
    %62 = vector.broadcast %cst_14 : f32 to vector<8x512xf32>
    %63 = arith.maximumf %61, %62 : vector<8x512xf32>
    %c0_15 = arith.constant 0 : index
    %c0_16 = arith.constant 0 : index
    %64 = vector.load %arg5[%c0_15, %c0_16] : memref<8x72xbf16, #tpu.memory_space<vmem>>, vector<8x72xbf16>
    %c17_i32_17 = arith.constant 17 : i32
    %65 = tpu.dynamic_rotate %63 by %c17_i32_17 dim 1 : vector<8x512xf32>, i32 -> vector<8x512xf32>
    %66 = vector.extract_strided_slice %0 {offsets = [0, 0], sizes = [1, 512], strides = [1, 1]} : vector<9x512xf32> to vector<1x512xf32>
    %67 = vector.broadcast %66 : vector<1x512xf32> to vector<8x512xf32>
    %68 = arith.mulf %65, %67 : vector<8x512xf32>
    %c16_i32_18 = arith.constant 16 : i32
    %69 = tpu.dynamic_rotate %63 by %c16_i32_18 dim 1 : vector<8x512xf32>, i32 -> vector<8x512xf32>
    %70 = vector.extract_strided_slice %0 {offsets = [1, 0], sizes = [1, 512], strides = [1, 1]} : vector<9x512xf32> to vector<1x512xf32>
    %71 = vector.broadcast %70 : vector<1x512xf32> to vector<8x512xf32>
    %72 = arith.mulf %69, %71 : vector<8x512xf32>
    %c15_i32_19 = arith.constant 15 : i32
    %73 = tpu.dynamic_rotate %63 by %c15_i32_19 dim 1 : vector<8x512xf32>, i32 -> vector<8x512xf32>
    %74 = vector.extract_strided_slice %0 {offsets = [2, 0], sizes = [1, 512], strides = [1, 1]} : vector<9x512xf32> to vector<1x512xf32>
    %75 = vector.broadcast %74 : vector<1x512xf32> to vector<8x512xf32>
    %76 = arith.mulf %73, %75 : vector<8x512xf32>
    %c1_i32_20 = arith.constant 1 : i32
    %77 = tpu.dynamic_rotate %63 by %c1_i32_20 dim 1 : vector<8x512xf32>, i32 -> vector<8x512xf32>
    %78 = vector.extract_strided_slice %0 {offsets = [3, 0], sizes = [1, 512], strides = [1, 1]} : vector<9x512xf32> to vector<1x512xf32>
    %79 = vector.broadcast %78 : vector<1x512xf32> to vector<8x512xf32>
    %80 = arith.mulf %77, %79 : vector<8x512xf32>
    %81 = vector.extract_strided_slice %0 {offsets = [4, 0], sizes = [1, 512], strides = [1, 1]} : vector<9x512xf32> to vector<1x512xf32>
    %82 = vector.broadcast %81 : vector<1x512xf32> to vector<8x512xf32>
    %83 = arith.mulf %63, %82 : vector<8x512xf32>
    %c511_i32_21 = arith.constant 511 : i32
    %84 = tpu.dynamic_rotate %63 by %c511_i32_21 dim 1 : vector<8x512xf32>, i32 -> vector<8x512xf32>
    %85 = vector.extract_strided_slice %0 {offsets = [5, 0], sizes = [1, 512], strides = [1, 1]} : vector<9x512xf32> to vector<1x512xf32>
    %86 = vector.broadcast %85 : vector<1x512xf32> to vector<8x512xf32>
    %87 = arith.mulf %84, %86 : vector<8x512xf32>
    %c497_i32_22 = arith.constant 497 : i32
    %88 = tpu.dynamic_rotate %63 by %c497_i32_22 dim 1 : vector<8x512xf32>, i32 -> vector<8x512xf32>
    %89 = vector.extract_strided_slice %0 {offsets = [6, 0], sizes = [1, 512], strides = [1, 1]} : vector<9x512xf32> to vector<1x512xf32>
    %90 = vector.broadcast %89 : vector<1x512xf32> to vector<8x512xf32>
    %91 = arith.mulf %88, %90 : vector<8x512xf32>
    %c496_i32_23 = arith.constant 496 : i32
    %92 = tpu.dynamic_rotate %63 by %c496_i32_23 dim 1 : vector<8x512xf32>, i32 -> vector<8x512xf32>
    %93 = vector.extract_strided_slice %0 {offsets = [7, 0], sizes = [1, 512], strides = [1, 1]} : vector<9x512xf32> to vector<1x512xf32>
    %94 = vector.broadcast %93 : vector<1x512xf32> to vector<8x512xf32>
    %95 = arith.mulf %92, %94 : vector<8x512xf32>
    %c495_i32_24 = arith.constant 495 : i32
    %96 = tpu.dynamic_rotate %63 by %c495_i32_24 dim 1 : vector<8x512xf32>, i32 -> vector<8x512xf32>
    %97 = vector.extract_strided_slice %0 {offsets = [8, 0], sizes = [1, 512], strides = [1, 1]} : vector<9x512xf32> to vector<1x512xf32>
    %98 = vector.broadcast %97 : vector<1x512xf32> to vector<8x512xf32>
    %99 = arith.mulf %96, %98 : vector<8x512xf32>
    %100 = tpu.concatenate %68, %72, %76, %80, %83, %87, %91, %95, %99 in 0 : vector<8x512xf32>, vector<8x512xf32>, vector<8x512xf32>, vector<8x512xf32>, vector<8x512xf32>, vector<8x512xf32>, vector<8x512xf32>, vector<8x512xf32>, vector<8x512xf32> -> vector<72x512xf32>
    %101 = arith.truncf %100 : vector<72x512xf32> to vector<72x512xbf16>
    %cst_25 = arith.constant dense<0.000000e+00> : vector<8x512xf32>
    %102 = tpu.matmul %64, %101, %cst_25 {dimension_numbers = #tpu.dot_dimension_numbers<[1], [0], [0], [1], [0, 0, 1, 1], [], []>} : vector<8x72xbf16>, vector<72x512xbf16>, vector<8x512xf32> -> vector<8x512xf32>
    %c0_26 = arith.constant 0 : index
    %c0_27 = arith.constant 0 : index
    %103 = vector.load %arg6[%c0_26, %c0_27] : memref<8x1xf32, #tpu.memory_space<vmem>>, vector<8x1xf32>
    %c0_28 = arith.constant 0 : index
    %c0_29 = arith.constant 0 : index
    %104 = vector.load %arg7[%c0_28, %c0_29] : memref<8x1xf32, #tpu.memory_space<vmem>>, vector<8x1xf32>
    %cst_30 = arith.constant dense<0.000000e+00> : vector<8xf32>
    %105 = vector.multi_reduction <add>, %102, %cst_30 [1] : vector<8x512xf32> to vector<8xf32>
    %106 = vector.shape_cast %105 : vector<8xf32> to vector<8x1xf32>
    %cst_31 = arith.constant 0.001953125 : f32
    %107 = vector.broadcast %cst_31 : f32 to vector<8x1xf32>
    %108 = arith.mulf %106, %107 : vector<8x1xf32>
    %109 = vector.broadcast %108 : vector<8x1xf32> to vector<8x512xf32>
    %110 = arith.subf %102, %109 : vector<8x512xf32>
    %111 = arith.mulf %110, %110 : vector<8x512xf32>
    %cst_32 = arith.constant dense<0.000000e+00> : vector<8xf32>
    %112 = vector.multi_reduction <add>, %111, %cst_32 [1] : vector<8x512xf32> to vector<8xf32>
    %113 = vector.shape_cast %112 : vector<8xf32> to vector<8x1xf32>
    %cst_33 = arith.constant 0.001953125 : f32
    %114 = vector.broadcast %cst_33 : f32 to vector<8x1xf32>
    %115 = arith.mulf %113, %114 : vector<8x1xf32>
    %cst_34 = arith.constant 9.99999974E-6 : f32
    %116 = vector.broadcast %cst_34 : f32 to vector<8x1xf32>
    %117 = arith.addf %115, %116 : vector<8x1xf32>
    %118 = math.rsqrt %117 : vector<8x1xf32>
    %119 = arith.mulf %118, %103 : vector<8x1xf32>
    %120 = vector.broadcast %119 : vector<8x1xf32> to vector<8x512xf32>
    %121 = arith.mulf %110, %120 : vector<8x512xf32>
    %122 = vector.broadcast %104 : vector<8x1xf32> to vector<8x512xf32>
    %123 = arith.addf %121, %122 : vector<8x512xf32>
    %cst_35 = arith.constant 0.000000e+00 : f32
    %124 = vector.broadcast %cst_35 : f32 to vector<8x512xf32>
    %125 = arith.maximumf %123, %124 : vector<8x512xf32>
    %c0_36 = arith.constant 0 : index
    %c0_37 = arith.constant 0 : index
    %126 = vector.load %arg8[%c0_36, %c0_37] : memref<8x512xf32, #tpu.memory_space<vmem>>, vector<8x512xf32>
    tpu.vector_store %arg8[%c0_36, %c0_37], %125 {strides = array<i32>} : memref<8x512xf32, #tpu.memory_space<vmem>>, vector<8x512xf32>,
    return
  }
}

</mosaic_0001>

<bundles_post_ra>
// kernel: double_conv_forward.1
= control target key start
LH: loop header
LB: loop body
LE: loop exit
PB: predicated region body
PF: predicated region fallthrough
CT: control target
= control target key end

     0   :  { %s903_s29 = smov 1   ;;  %s904_s30 = smov 16   ;;  %v910_v4 = vmov 0   ;;  %v55_v5 = vlaneseq  ;;  %vm393_vm4 = vcmask 1043456   ;;  %vm426_vm9 = vcmask 1041408   ;;  %s1586_s0 = inlined_call_operand.vmem [shape: f32[4,512], index: 0, kind: input, shape index: {}]   ;;  %s1587_s1 = inlined_call_operand.vmem [shape: f32[9,512], index: 1, kind: input, shape index: {}]   ;;  %s1588_s2 = inlined_call_operand.vmem [shape: bf16[8,36], index: 2, kind: input, shape index: {}]   ;;  %s1589_s4 = inlined_call_operand.vmem [shape: f32[8,1], index: 4, kind: input, shape index: {}]   ;;  %s1590_s3 = inlined_call_operand.vmem [shape: f32[8,1], index: 3, kind: input, shape index: {}]   ;;  %s1591_s5 = inlined_call_operand.vmem [shape: bf16[8,72], index: 5, kind: input, shape index: {}]   ;;  %s1592_s7 = inlined_call_operand.vmem [shape: f32[8,1], index: 7, kind: input, shape index: {}]   ;;  %s1593_s6 = inlined_call_operand.vmem [shape: f32[8,1], index: 6, kind: input, shape index: {}]   ;;  %s1594_s8 = inlined_call_operand.vmem [shape: f32[8,512], index: 8, kind: output, shape index: {}]  }
   0x1   :  { %v960_v0 = vld [vmem:[%s1586_s0] sm:$0xff]  ;;  %v971_v2 = vld [vmem:[%s1586_s0 + $0x8] sm:$0xff]  ;;  %s905_s11 = smov 17   ;;  %s906_s12 = smov 15   ;;  %471 = vmatprep.mubr.bf16.mxu0 %v910_v4  ;;  %512 = vmatprep.mubr.bf16.mxu1 %v910_v4  ;;  %v1126_v53 = vld [vmem:[%s1587_s1 + $0x10] sm:$0xff]  ;;  %vm422_vm10 = vcmask 293888  }
   0x2   :  { %148 = vrot.lane.b32.xlu1 %v960_v0, %s903_s29  ;;  %82 = vrot.lane.b32.xlu0 %v960_v0, %s904_s30  ;;  %v43_v1 = vcombine.high %v960_v0, %v960_v0  ;;  %v44_v3 = vcombine.high %v971_v2, %v971_v2  ;;  %s907_s0 = smov 127   ;;  %s908_s13 = smov 112   ;;  %v1023_v8 = vshrl.u32 %v55_v5, 7  ;;  %v1025_v9 = vand.u32 127, %v55_v5  ;;  %v1036_v14 = vld [vmem:[%s1587_s1 + $0x8] sm:$0xff]  ;;  %v1077_v29 = vld [vmem:[%s1587_s1] sm:$0xff] }
   0x3   :  { %s909_s14 = smov 113   ;;  %895 = vset.pattern.permute.xlu0 %v910_v4  ;;  %896 = vset.pattern.permute.xlu1 %v910_v4  ;;  %s911_s15 = smov 111   ;;  %v1131_v54 = vld [vmem:[%s1587_s1 + $0x18] sm:$0xff]  ;;  %vm721_vm11 = vcmask 588800  }
   0x4   :  { %v163_v12 = vsub.s32 3, %v1023_v8  ;;  %v97_v13 = vsub.s32 1, %v1023_v8  ;;  %vm156_vm0 = vcmp.lt.s32.totalorder %v1025_v9, 1  ;;  %vm90_vm1 = vcmp.lt.s32.totalorder %v1025_v9, 16 }
   0x5   :  { %v1045_v17 = vsub.s32 0, %v1023_v8  ;;  %vm57_vm2 = vcmp.lt.s32.totalorder %v1025_v9, 17  ;;  %v1055_v20 = vsub.s32 2, %v1023_v8  ;;  %vm123_vm3 = vcmp.lt.s32.totalorder %v1025_v9, 15 }
   0x6   :  { %150 = vrot.lane.b32.xlu1 %v43_v1, %s903_s29  ;;  %84 = vrot.lane.b32.xlu0 %v43_v1, %s904_s30  ;;  %v1048_v18 = vrot.slane %v1036_v14, %v163_v12  ;;  %v1051_v19 = vrot.slane %v1036_v14, %v97_v13  ;;  %v1088_v34 = vrot.slane %v1077_v29, %v163_v12  ;;  %v1112_v47 = vsub.s32 4, %v1023_v8 }
   0x7   :  { %v1067_v24 = vrot.slane %v1036_v14, %v1045_v17  ;;  %v1082_v30 = vrot.slane %v1036_v14, %v1055_v20  ;;  %v1094_v38 = vrot.slane %v1077_v29, %v97_v13  ;;  %v1105_v43 = vrot.slane %v1077_v29, %v1045_v17 }
   0x8   :  { %v1121_v52 = vrot.slane %v1077_v29, %v1055_v20  ;;  %v1136_v58 = vrot.slane %v1077_v29, %v1112_v47  ;;  %v1140_v59 = vrot.slane %v1036_v14, %v1112_v47  ;;  %v1145_v63 = vrot.slane %v1126_v53, %v97_v13 }
   0x9   :  { %v1152_v5 = vrot.slane %v1126_v53, %v163_v12  ;;  %vm215_vm5 = vcmp.lt.s32.totalorder %v1025_v9, 127  ;;  %vm281_vm6 = vcmp.lt.s32.totalorder %v1025_v9, 112  ;;  %vm248_vm7 = vcmp.lt.s32.totalorder %v1025_v9, 113 }
   0xa   :  { %154 = vrot.lane.b32.xlu1 %v44_v3, %s903_s29  ;;  %88 = vrot.lane.b32.xlu0 %v44_v3, %s904_s30  ;;  %vm314_vm8 = vcmp.lt.s32.totalorder %v1025_v9, 111 }
   0xe   :  { %49 = vrot.lane.b32.xlu1 %v43_v1, %s905_s11  ;;  %47 = vrot.lane.b32.xlu0 %v960_v0, %s905_s11 }
  0x12   :  { %117 = vrot.lane.b32.xlu1 %v43_v1, %s906_s12  ;;  %115 = vrot.lane.b32.xlu0 %v960_v0, %s906_s12 }
  0x16   :  { %86 = vrot.lane.b32.xlu1 %v971_v2, %s904_s30  ;;  %53 = vrot.lane.b32.xlu0 %v44_v3, %s905_s11 }
  0x1a   :  { %152 = vrot.lane.b32.xlu1 %v971_v2, %s903_s29  ;;  %121 = vrot.lane.b32.xlu0 %v44_v3, %s906_s12 }
  0x1e   :  { %211 = vrot.lane.b32.xlu1 %v971_v2, %s907_s0  ;;  %209 = vrot.lane.b32.xlu0 %v43_v1, %s907_s0 }
  0x22   :  { %277 = vrot.lane.b32.xlu1 %v971_v2, %s908_s13  ;;  %275 = vrot.lane.b32.xlu0 %v43_v1, %s908_s13 }
  0x26   :  { %119 = vrot.lane.b32.xlu1 %v971_v2, %s906_s12  ;;  %51 = vrot.lane.b32.xlu0 %v971_v2, %s905_s11 }
  0x2a   :  { %273 = vrot.lane.b32.xlu1 %v960_v0, %s908_s13  ;;  %207 = vrot.lane.b32.xlu0 %v960_v0, %s907_s0 }
  0x2e   :  { %244 = vrot.lane.b32.xlu1 %v971_v2, %s909_s14  ;;  %242 = vrot.lane.b32.xlu0 %v43_v1, %s909_s14 }
  0x32   :  { %240 = vrot.lane.b32.xlu1 %v960_v0, %s909_s14  ;;  %213 = vrot.lane.b32.xlu0 %v44_v3, %s907_s0 }
  0x36   :  { %246 = vrot.lane.b32.xlu1 %v44_v3, %s909_s14  ;;  %279 = vrot.lane.b32.xlu0 %v44_v3, %s908_s13 }
  0x3a   :  { %308 = vrot.lane.b32.xlu1 %v43_v1, %s911_s15  ;;  %306 = vrot.lane.b32.xlu0 %v960_v0, %s911_s15 }
  0x3e   :  { %312 = vrot.lane.b32.xlu1 %v44_v3, %s911_s15  ;;  %310 = vrot.lane.b32.xlu0 %v971_v2, %s911_s15  ;;  %v1149_v3 = vrot.slane %v1131_v54, %v97_v13 }
  0x74   :  { %v149_v6 = vpop.permute.xlu1 %148  ;;  %v83_v7 = vpop.permute.xlu0 %82 }
  0x78   :  { %v1027_v10 = vpop.permute.xlu1 %150  ;;  %v1029_v11 = vpop.permute.xlu0 %84 }
  0x79   :  { %v159_v21 = vsel %vm156_vm0, %v149_v6, %v1027_v10  ;;  %v93_v22 = vsel %vm90_vm1, %v83_v7, %v1029_v11 }
  0x7a   :  { %v178_v27 = vmul.f32 %v1048_v18, %v159_v21  ;;  %v112_v28 = vmul.f32 %v1051_v19, %v93_v22 }
  0x7c   :  { %v1040_v15 = vpop.permute.xlu1 %154  ;;  %v1042_v16 = vpop.permute.xlu0 %88  ;;  %v356_v36 = vrot.slane %v178_v27, 4  ;;  %v344_v37 = vrot.slane %v112_v28, 4  ;;  %v201_v27 = vcombine.low %v1136_v58, %v1140_v59 }
  0x7d   :  { %v160_v40 = vsel %vm156_vm0, %v1040_v15, %v149_v6  ;;  %v94_v41 = vsel %vm90_vm1, %v1042_v16, %v83_v7  ;;  %v1155_v6 = vrot.slane %v1131_v54, %v163_v12  ;;  %v1158_v7 = vsub.s32 5, %v1023_v8 }
  0x7e   :  { %v177_v50 = vmul.f32 %v1088_v34, %v160_v40  ;;  %v111_v51 = vmul.f32 %v1094_v38, %v94_v41  ;;  %v1194_v40 = vmul.f32 %v201_v27, %v960_v0  ;;  %v1198_v41 = vrot.slane %v1126_v53, %v1055_v20 }
  0x80   :  { %v1063_v23 = vpop.permute.xlu1 %49  ;;  %v48_v25 = vpop.permute.xlu0 %47  ;;  %v355_v61 = vrot.slane %v177_v50, 4  ;;  %v343_v62 = vrot.slane %v111_v51, 4 }
  0x81   :  { %v60_v26 = vsel %vm57_vm2, %v48_v25, %v1063_v23 }
  0x82   :  { %v79_v31 = vmul.f32 %v1067_v24, %v60_v26 }
  0x84   :  { %v1085_v32 = vpop.permute.xlu1 %117  ;;  %v116_v33 = vpop.permute.xlu0 %115  ;;  %v395_v45 = vsel %vm393_vm4, %v79_v31, %v344_v37 }
  0x85   :  { %v126_v35 = vsel %vm123_vm3, %v116_v33, %v1085_v32 }
  0x86   :  { %v145_v39 = vmul.f32 %v1082_v30, %v126_v35  ;;  %v1180_v35 = vsub.s32 7, %v1023_v8 }
  0x88   :  { %v87_v42 = vpop.permute.xlu1 %86  ;;  %v1107_v44 = vpop.permute.xlu0 %53  ;;  %v399_v46 = vsel %vm393_vm4, %v145_v39, %v356_v36  ;;  %v1214_v0 = vrot.slane %v1036_v14, %v1180_v35 }
  0x89   :  { %v61_v48 = vsel %vm57_vm2, %v1107_v44, %v48_v25  ;;  %v411_v49 = vpack.c.bf16 %v399_v46, %v395_v45  ;;  %v92_v21 = vsel %vm90_vm1, %v1029_v11, %v87_v42  ;;  %v91_v12 = vsel %vm90_vm1, %v87_v42, %v1042_v16 }
  0x8a   :  { %v78_v55 = vmul.f32 %v1105_v43, %v61_v48  ;;  %v114_v36 = vmul.f32 %v1149_v3, %v91_v12  ;;  %v1202_v42 = vrot.slane %v1131_v54, %v1055_v20  ;;  %v1206_v45 = vrot.slane %v1126_v53, %v1045_v17 }
  0x8b   :  { %439 = vmatprep.subr.bf16.mxu0 %v411_v49  ;;  %v1210_v46 = vrot.slane %v1131_v54, %v1045_v17  ;;  %v1218_v49 = vrot.slane %v1077_v29, %v1180_v35  ;;  %v1221_v20 = vsub.s32 6, %v1023_v8 }
  0x8c   :  { %v153_v56 = vpop.permute.xlu1 %152  ;;  %v122_v57 = vpop.permute.xlu0 %121  ;;  %v394_v26 = vsel %vm393_vm4, %v78_v55, %v343_v62  ;;  %v346_v50 = vrot.slane %v114_v36, 4 }
  0x8d   :  { %v127_v60 = vsel %vm123_vm3, %v122_v57, %v116_v33  ;;  %v157_v28 = vsel %vm156_vm0, %v153_v56, %v1040_v15  ;;  %v158_v11 = vsel %vm156_vm0, %v1027_v10, %v153_v56  ;;  %v113_v33 = vmul.f32 %v1145_v63, %v92_v21 }
  0x8e   :  { %v144_v1 = vmul.f32 %v1121_v52, %v127_v60  ;;  %v179_v37 = vmul.f32 %v1152_v5, %v158_v11  ;;  %v180_v16 = vmul.f32 %v1155_v6, %v157_v28  ;;  %v1190_v10 = vrot.slane %v1036_v14, %v1158_v7 }
  0x8f   :  { %v345_v48 = vrot.slane %v113_v33, 4 }
  0x90   :  { %v1163_v22 = vpop.permute.xlu1 %211  ;;  %v210_v25 = vpop.permute.xlu0 %209  ;;  %v398_v13 = vsel %vm393_vm4, %v144_v1, %v355_v61  ;;  %v357_v51 = vrot.slane %v179_v37, 4  ;;  %v358_v55 = vrot.slane %v180_v16, 4 }
  0x91   :  { %v410_v31 = vpack.c.bf16 %v398_v13, %v394_v26  ;;  %v217_v17 = vsel %vm215_vm5, %v210_v25, %v1163_v22 }
  0x92   :  { %v237_v27 = vmul.f32 %v1190_v10, %v217_v17 }
  0x93   :  { %440 = vmatpush1.bf16.msra.mxu0 %v410_v31 }
  0x94   :  { %v1185_v39 = vpop.permute.xlu1 %277  ;;  %v276_v15 = vpop.permute.xlu0 %275 }
  0x98   :  { %v120_v56 = vpop.permute.xlu1 %119  ;;  %v52_v60 = vpop.permute.xlu0 %51 }
  0x99   :  { %v124_v61 = vsel %vm123_vm3, %v120_v56, %v122_v57  ;;  %v125_v62 = vsel %vm123_vm3, %v1085_v32, %v120_v56  ;;  %v58_v8 = vsel %vm57_vm2, %v52_v60, %v1107_v44  ;;  %v59_v1 = vsel %vm57_vm2, %v1063_v23, %v52_v60 }
  0x9a   :  { %v146_v21 = vmul.f32 %v1198_v41, %v125_v62  ;;  %v147_v26 = vmul.f32 %v1202_v42, %v124_v61  ;;  %v80_v13 = vmul.f32 %v1206_v45, %v59_v1  ;;  %v81_v57 = vmul.f32 %v1210_v46, %v58_v8 }
  0x9b   :  { %v283_v32 = vsel %vm281_vm6, %v276_v15, %v1185_v39  ;;  %v1247_v44 = vrot.slane %v1126_v53, %v1112_v47  ;;  %v1251_v23 = vrot.slane %v1131_v54, %v1112_v47  ;;  %v1262_v47 = vrot.slane %v1077_v29, %v1158_v7 }
  0x9c   :  { %v274_v12 = vpop.permute.xlu1 %273  ;;  %v208_v28 = vpop.permute.xlu0 %207  ;;  %v397_v11 = vsel %vm393_vm4, %v81_v57, %v346_v50  ;;  %v401_v31 = vsel %vm393_vm4, %v147_v26, %v358_v55  ;;  %v396_v33 = vsel %vm393_vm4, %v80_v13, %v345_v48  ;;  %v400_v36 = vsel %vm393_vm4, %v146_v21, %v357_v51 }
  0x9d   :  { %v284_v37 = vsel %vm281_vm6, %v274_v12, %v276_v15  ;;  %v413_v16 = vpack.c.bf16 %v401_v31, %v397_v11  ;;  %v412_v17 = vpack.c.bf16 %v400_v36, %v396_v33  ;;  %v303_v56 = vmul.f32 %v1214_v0, %v283_v32 }
  0x9e   :  { %v1267_v50 = vrot.slane %v1036_v14, %v1221_v20  ;;  %v218_v48 = vsel %vm215_vm5, %v208_v28, %v210_v25  ;;  %v374_v51 = vrot.slane %v237_v27, 4  ;;  %v302_v15 = vmul.f32 %v1218_v49, %v284_v37 }
  0x9f   :  { %480 = vmatprep.subr.bf16.mxu1 %v413_v16  ;;  %v365_v61 = vcombine.high %v1194_v40, %v1194_v40  ;;  %v202_v62 = vcombine.low %v1247_v44, %v1251_v23  ;;  %v1280_v8 = vrot.slane %v1077_v29, %v1221_v20  ;;  %v1284_v25 = vrot.slane %v1126_v53, %v1158_v7 }
  0xa0   :  { %v245_v55 = vpop.permute.xlu1 %244  ;;  %481 = vmatpush1.bf16.msra.mxu1 %v412_v17  ;;  %v243_v60 = vpop.permute.xlu0 %242  ;;  %v386_v1 = vrot.slane %v303_v56, 4  ;;  %v236_v21 = vmul.f32 %v1262_v47, %v218_v48  ;;  %v1290_v13 = vrot.slane %v1131_v54, %v1158_v7  ;;  %v1294_v57 = vrot.slane %v1126_v53, %v1180_v35 }
  0xa1   :  { %v250_v14 = vsel %vm248_vm7, %v243_v60, %v245_v55  ;;  %v1298_v29 = vrot.slane %v1131_v54, %v1180_v35  ;;  %v385_v27 = vrot.slane %v302_v15, 4  ;;  %v403_v31 = vsel %vm393_vm4, %v365_v61, %v374_v51 }
  0xa2   :  { %v270_v26 = vmul.f32 %v1267_v50, %v250_v14  ;;  %v206_v36 = vmul.f32 %v202_v62, %v971_v2  ;;  %v373_v17 = vrot.slane %v236_v21, 4  ;;  %v1315_v2 = vrot.slane %v1126_v53, %v1221_v20 }
  0xa3   :  { %v1319_v15 = vrot.slane %v1131_v54, %v1221_v20 }
  0xa4   :  { %v241_v32 = vpop.permute.xlu1 %240  ;;  %v214_v11 = vpop.permute.xlu0 %213  ;;  %v407_v33 = vsel %vm393_vm4, %v270_v26, %v386_v1  ;;  %v366_v62 = vcombine.high %v206_v36, %v206_v36 }
  0xa5   :  { %v251_v7 = vsel %vm248_vm7, %v241_v32, %v243_v60  ;;  %v216_v37 = vsel %vm215_vm5, %v1163_v22, %v214_v11  ;;  %v219_v35 = vsel %vm215_vm5, %v214_v11, %v208_v28  ;;  %v415_v16 = vpack.c.bf16 %v407_v33, %v403_v31 }
  0xa6   :  { %v269_v56 = vmul.f32 %v1280_v8, %v251_v7  ;;  %v238_v48 = vmul.f32 %v1284_v25, %v216_v37  ;;  %v239_v51 = vmul.f32 %v1290_v13, %v219_v35 }
  0xa7   :  { %441 = vmatprep.subr.bf16.mxu0 %v415_v16 }
  0xa8   :  { %v376_v22 = vrot.slane %v239_v51, 4  ;;  %v247_v60 = vpop.permute.xlu1 %246  ;;  %v280_v28 = vpop.permute.xlu0 %279  ;;  %v406_v61 = vsel %vm393_vm4, %v269_v56, %v385_v27  ;;  %v375_v20 = vrot.slane %v238_v48, 4  ;;  %v402_v27 = vsel %vm393_vm4, %v1194_v40, %v373_v17  ;;  %v1353_v48 = vld [vmem:[%s1587_s1 + $0x38] ss:$0 sm:$0xff]  ;;  %v1358_v51 = vld [vmem:[%s1587_s1 + $0x28] ss:$0 sm:$0xff] }
  0xa9   :  { %v249_v14 = vsel %vm248_vm7, %v245_v55, %v247_v60  ;;  %v252_v1 = vsel %vm248_vm7, %v247_v60, %v241_v32  ;;  %v282_v53 = vsel %vm281_vm6, %v1185_v39, %v280_v28  ;;  %v285_v54 = vsel %vm281_vm6, %v280_v28, %v274_v12  ;;  %v1339_v55 = vld [vmem:[%s1587_s1 + $0x20] ss:$0 sm:$0xff] }
  0xaa   :  { %v304_v21 = vmul.f32 %v1294_v57, %v282_v53  ;;  %v305_v26 = vmul.f32 %v1298_v29, %v285_v54  ;;  %v414_v11 = vpack.c.bf16 %v406_v61, %v402_v27  ;;  %v271_v32 = vmul.f32 %v1315_v2, %v249_v14 }
  0xab   :  { %v272_v39 = vmul.f32 %v1319_v15, %v252_v1  ;;  %v405_v40 = vsel %vm393_vm4, %v366_v62, %v376_v22  ;;  %v404_v17 = vsel %vm393_vm4, %v206_v36, %v375_v20  ;;  %v1363_v22 = vld [vmem:[%s1587_s1 + $0x30] ss:$0 sm:$0xff] }
  0xac   :  { %v387_v31 = vrot.slane %v304_v21, 4  ;;  %v388_v12 = vrot.slane %v305_v26, 4  ;;  %v309_v33 = vpop.permute.xlu1 %308  ;;  %v307_v7 = vpop.permute.xlu0 %306  ;;  %442 = vmatpush1.bf16.msra.mxu0 %v414_v11 }
  0xad   :  { %v317_v37 = vsel %vm314_vm8, %v307_v7, %v309_v33 }
  0xae   :  { %v335_v35 = vmul.f32 %v1339_v55, %v317_v37  ;;  %v409_v16 = vsel %vm393_vm4, %v272_v39, %v388_v12  ;;  %v408_v56 = vsel %vm393_vm4, %v271_v32, %v387_v31  ;;  %v40_v31 = vld [vmem:[%s1588_s2] sm:$0xf] }
  0xaf   :  { %v417_v60 = vpack.c.bf16 %v409_v16, %v405_v40  ;;  %v416_v28 = vpack.c.bf16 %v408_v56, %v404_v17 }
  0xb0   :  { %v313_v36 = vpop.permute.xlu1 %312  ;;  %v311_v61 = vpop.permute.xlu0 %310  ;;  %v418_v53 = vpack.c.bf16 %v335_v35, %v335_v35 }
  0xb1   :  { %v318_v62 = vsel %vm314_vm8, %v313_v36, %v307_v7  ;;  %v315_v14 = vsel %vm314_vm8, %v311_v61, %v313_v36  ;;  %v316_v1 = vsel %vm314_vm8, %v309_v33, %v311_v61  ;;  %482 = vmatprep.subr.bf16.mxu1 %v417_v60 }
  0xb2   :  { %v338_v54 = vmul.f32 %v1353_v48, %v318_v62  ;;  %v336_v20 = vmul.f32 %v1358_v51, %v316_v1  ;;  %v337_v21 = vmul.f32 %v1363_v22, %v315_v14  ;;  %483 = vmatpush1.bf16.msra.mxu1 %v416_v28  ;;  %v428_v32 = vsel %vm426_vm9, %v418_v53, 0 }
  0xb4   :  { %v421_v26 = vpack.c.bf16 %v338_v54, %v338_v54  ;;  %v419_v27 = vpack.c.bf16 %v336_v20, %v336_v20  ;;  %v420_v11 = vpack.c.bf16 %v337_v21, %v337_v21 }
  0xb6   :  { %878 = vmatprep.subr.msk.bf16.mxu0 %vm426_vm9, %v419_v27  ;;  %880 = vmatprep.subr.msk.bf16.mxu1 %vm426_vm9, %v421_v26  ;;  %v434_v39 = vsel %vm426_vm9, %v420_v11, 0 }
  0xb7   :  { %444 = vmatpush1.bf16.msra.mxu0 %v428_v32  ;;  %485 = vmatpush1.bf16.msra.mxu1 %v434_v39  ;;  %v522_v32 = vld [vmem:[%s1589_s4] sm:$0xff] }
  0xba   :  { %879 = vmatmul.mubr.msk.bf16.vlgmr.msra.gmra.mrb[0].mxu0 %vm422_vm10, %v40_v31  ;;  %881 = vmatmul.mubr.msk.bf16.vlgmr.msra.gmra.mrb[0].mxu1 %vm422_vm10, %v40_v31 }
  0xbb   :  { %769 = vmatprep.mubr.bf16.mxu0 %v910_v4  ;;  %810 = vmatprep.mubr.bf16.mxu1 %v910_v4 }
 0x18d   :  { %v473_v12 = vpop.f32.mrb[0].mxu0  ;;  %v514_v33 = vpop.f32.mrb[0].mxu1 }
 0x18e   :  { %v475_v7 = vpop.f32.mrb[1].mxu0  ;;  %v516_v37 = vpop.f32.mrb[1].mxu1 }
 0x18f   :  { %v523_v40 = vadd.f32 %v475_v7, %v473_v12  ;;  %v477_v35 = vpop.f32.mrb[2].mxu0  ;;  %v518_v16 = vpop.f32.mrb[2].mxu1 }
 0x190   :  { %v478_v17 = vpop.f32.mrb[3].mxu0  ;;  %v519_v56 = vpop.f32.mrb[3].mxu1 }
 0x191   :  { %v524_v60 = vadd.f32 %v523_v40, %v514_v33 }
 0x193   :  { %v525_v28 = vadd.f32 %v524_v60, %v516_v37 }
 0x195   :  { %526 = vadd.xlane.f32.xlu0 %v525_v28 }
 0x222   :  { %v527_v36 = vpop.xlane.xlu0 %526 }
 0x223   :  { %v528_v61 = vmul.f32 0.001953125, %v527_v36 }
 0x225   :  { %v529_v62 = vsub.f32 %v473_v12, %v528_v61  ;;  %v530_v14 = vsub.f32 %v475_v7, %v528_v61  ;;  %v531_v1 = vsub.f32 %v514_v33, %v528_v61  ;;  %v532_v53 = vsub.f32 %v516_v37, %v528_v61  ;;  %v521_v12 = vld [vmem:[%s1590_s3] sm:$0xff] }
 0x227   :  { %v533_v54 = vmul.f32 %v529_v62, %v529_v62  ;;  %v534_v4 = vmul.f32 %v530_v14, %v530_v14  ;;  %v535_v20 = vmul.f32 %v531_v1, %v531_v1  ;;  %v536_v26 = vmul.f32 %v532_v53, %v532_v53 }
 0x229   :  { %v537_v21 = vadd.f32 %v534_v4, %v533_v54 }
 0x22b   :  { %v538_v27 = vadd.f32 %v537_v21, %v535_v20 }
 0x22d   :  { %v539_v11 = vadd.f32 %v538_v27, %v536_v26 }
 0x22f   :  { %540 = vadd.xlane.f32.xlu1 %v539_v11 }
 0x240   :  { %557 = vperm.xlu1 %896, %v522_v32  }
 0x2bc   :  { %v541_v39 = vpop.xlane.xlu1 %540 }
 0x2bd   :  { %v542_v31 = vmul.f32 0.001953125, %v541_v39 }
 0x2bf   :  { %v543_v40 = vadd.f32 1e-05, %v542_v31 }
 0x2c0   :  { %v558_v35 = vpop.permute.xlu1 %557 }
 0x2c1   :  { %899 = vrsqrt.f32 %v543_v40 }
 0x2cb   :  { %v900_v33 = vpop.eup %899 }
 0x2cc   :  { %v545_v7 = vmul.f32 %v900_v33, %v521_v12 }
 0x2ce   :  { %548 = vperm.xlu0 %895, %v545_v7  }
 0x34d   :  { %v549_v37 = vpop.permute.xlu0 %548 }
 0x34e   :  { %v551_v16 = vmul.f32 %v549_v37, %v529_v62  ;;  %v552_v17 = vmul.f32 %v549_v37, %v530_v14  ;;  %v553_v56 = vmul.f32 %v549_v37, %v531_v1  ;;  %v554_v4 = vmul.f32 %v549_v37, %v532_v53 }
 0x350   :  { %v560_v60 = vadd.f32 %v558_v35, %v551_v16  ;;  %v562_v28 = vadd.f32 %v558_v35, %v553_v56  ;;  %v561_v36 = vadd.f32 %v558_v35, %v552_v17  ;;  %v563_v62 = vadd.f32 %v558_v35, %v554_v4 }
 0x352   :  { %v1385_v61 = vmax.f32 %v560_v60, 0.0  ;;  %v1387_v54 = vmax.f32 %v562_v28, 0.0  ;;  %v1393_v20 = vmax.f32 %v561_v36, 0.0  ;;  %v1403_v14 = vmax.f32 %v563_v62, 0.0 }
 0x354   :  { %573 = vrot.lane.b32.xlu0 %v1387_v54, %s905_s11  ;;  %569 = vrot.lane.b32.xlu1 %v1385_v61, %s905_s11 }
 0x358   :  { %601 = vrot.lane.b32.xlu0 %v1385_v61, %s906_s12  ;;  %571 = vrot.lane.b32.xlu1 %v1393_v20, %s905_s11 }
 0x35c   :  { %617 = vrot.lane.b32.xlu0 %v1385_v61, %s903_s29  ;;  %585 = vrot.lane.b32.xlu1 %v1385_v61, %s904_s30 }
 0x360   :  { %607 = vrot.lane.b32.xlu0 %v1403_v14, %s906_s12  ;;  %587 = vrot.lane.b32.xlu1 %v1393_v20, %s904_s30 }
 0x364   :  { %605 = vrot.lane.b32.xlu0 %v1387_v54, %s906_s12  ;;  %575 = vrot.lane.b32.xlu1 %v1403_v14, %s905_s11 }
 0x368   :  { %639 = vrot.lane.b32.xlu0 %v1393_v20, %s907_s0  ;;  %591 = vrot.lane.b32.xlu1 %v1403_v14, %s904_s30 }
 0x36c   :  { %637 = vrot.lane.b32.xlu0 %v1385_v61, %s907_s0  ;;  %589 = vrot.lane.b32.xlu1 %v1387_v54, %s904_s30 }
 0x370   :  { %655 = vrot.lane.b32.xlu0 %v1393_v20, %s909_s14  ;;  %603 = vrot.lane.b32.xlu1 %v1393_v20, %s906_s12 }
 0x374   :  { %671 = vrot.lane.b32.xlu0 %v1393_v20, %s908_s13  ;;  %619 = vrot.lane.b32.xlu1 %v1393_v20, %s903_s29 }
 0x378   :  { %653 = vrot.lane.b32.xlu0 %v1385_v61, %s909_s14  ;;  %623 = vrot.lane.b32.xlu1 %v1403_v14, %s903_s29 }
 0x37c   :  { %659 = vrot.lane.b32.xlu0 %v1403_v14, %s909_s14  ;;  %621 = vrot.lane.b32.xlu1 %v1387_v54, %s903_s29 }
 0x380   :  { %685 = vrot.lane.b32.xlu0 %v1385_v61, %s911_s15  ;;  %641 = vrot.lane.b32.xlu1 %v1387_v54, %s907_s0 }
 0x384   :  { %689 = vrot.lane.b32.xlu0 %v1387_v54, %s911_s15  ;;  %643 = vrot.lane.b32.xlu1 %v1403_v14, %s907_s0 }
 0x388   :  { %657 = vrot.lane.b32.xlu1 %v1387_v54, %s909_s14 }
 0x38c   :  { %673 = vrot.lane.b32.xlu1 %v1387_v54, %s908_s13 }
 0x390   :  { %669 = vrot.lane.b32.xlu1 %v1385_v61, %s908_s13 }
 0x394   :  { %675 = vrot.lane.b32.xlu1 %v1403_v14, %s908_s13 }
 0x398   :  { %687 = vrot.lane.b32.xlu1 %v1393_v20, %s911_s15 }
 0x39c   :  { %691 = vrot.lane.b32.xlu1 %v1403_v14, %s911_s15 }
 0x3c6   :  { %v574_v1 = vpop.permute.xlu0 %573  ;;  %v570_v53 = vpop.permute.xlu1 %569 }
 0x3ca   :  { %v602_v21 = vpop.permute.xlu0 %601  ;;  %v572_v26 = vpop.permute.xlu1 %571 }
 0x3cb   :  { %v579_v32 = vsel %vm57_vm2, %v570_v53, %v572_v26 }
 0x3cc   :  { %v582_v40 = vmul.f32 %v579_v32, %v1067_v24  ;;  %v578_v24 = vsel %vm57_vm2, %v572_v26, %v574_v1 }
 0x3ce   :  { %v618_v27 = vpop.permute.xlu0 %617  ;;  %v586_v11 = vpop.permute.xlu1 %585 }
 0x3d2   :  { %v588_v39 = vpop.permute.xlu1 %587  ;;  %v608_v12 = vpop.permute.xlu0 %607 }
 0x3d3   :  { %v595_v31 = vsel %vm90_vm1, %v586_v11, %v588_v39 }
 0x3d4   :  { %v598_v33 = vmul.f32 %v595_v31, %v1051_v19 }
 0x3d6   :  { %v576_v7 = vpop.permute.xlu1 %575  ;;  %v702_v37 = vpack.c.bf16 %v598_v33, %v582_v40  ;;  %v606_v16 = vpop.permute.xlu0 %605 }
 0x3d7   :  { %v580_v35 = vsel %vm57_vm2, %v576_v7, %v570_v53  ;;  %v577_v19 = vsel %vm57_vm2, %v574_v1, %v576_v7 }
 0x3d8   :  { %737 = vmatprep.subr.bf16.mxu0 %v702_v37  ;;  %v581_v60 = vmul.f32 %v580_v35, %v1105_v43  ;;  %v584_v43 = vmul.f32 %v577_v19, %v1210_v46 }
 0x3da   :  { %v592_v17 = vpop.permute.xlu1 %591  ;;  %v640_v32 = vpop.permute.xlu0 %639 }
 0x3db   :  { %v596_v56 = vsel %vm90_vm1, %v592_v17, %v586_v11  ;;  %v583_v11 = vmul.f32 %v578_v24, %v1206_v45 }
 0x3dc   :  { %v597_v28 = vmul.f32 %v596_v56, %v1094_v38 }
 0x3de   :  { %v701_v36 = vpack.c.bf16 %v597_v28, %v581_v60  ;;  %v590_v4 = vpop.permute.xlu1 %589  ;;  %v638_v7 = vpop.permute.xlu0 %637  ;;  %v609_v60 = vsel %vm123_vm3, %v606_v16, %v608_v12 }
 0x3df   :  { %v593_v62 = vsel %vm90_vm1, %v590_v4, %v592_v17  ;;  %v594_v53 = vsel %vm90_vm1, %v588_v39, %v590_v4 }
 0x3e0   :  { %v599_v38 = vmul.f32 %v594_v53, %v1145_v63  ;;  %v600_v26 = vmul.f32 %v593_v62, %v1149_v3  ;;  %738 = vmatpush1.bf16.msra.mxu0 %v701_v36  ;;  %v612_v3 = vsel %vm123_vm3, %v608_v12, %v602_v21 }
 0x3e1   :  { %v613_v56 = vmul.f32 %v612_v3, %v1121_v52 }
 0x3e2   :  { %v703_v31 = vpack.c.bf16 %v599_v38, %v583_v11  ;;  %v604_v1 = vpop.permute.xlu1 %603  ;;  %v704_v40 = vpack.c.bf16 %v600_v26, %v584_v43  ;;  %v656_v28 = vpop.permute.xlu0 %655 }
 0x3e3   :  { %v611_v33 = vsel %vm123_vm3, %v602_v21, %v604_v1  ;;  %v616_v21 = vmul.f32 %v609_v60, %v1202_v42 }
 0x3e4   :  { %778 = vmatprep.subr.bf16.mxu1 %v704_v40  ;;  %v614_v46 = vmul.f32 %v611_v33, %v1082_v30 }
 0x3e5   :  { %779 = vmatpush1.bf16.msra.mxu1 %v703_v31 }
 0x3e6   :  { %v620_v39 = vpop.permute.xlu1 %619 }
 0x3e7   :  { %v627_v45 = vsel %vm156_vm0, %v618_v27, %v620_v39 }
 0x3e8   :  { %v630_v63 = vmul.f32 %v627_v45, %v1048_v18  ;;  %v610_v18 = vsel %vm123_vm3, %v604_v1, %v606_v16  ;;  %v672_v16 = vpop.permute.xlu0 %671 }
 0x3e9   :  { %v615_v12 = vmul.f32 %v610_v18, %v1198_v41  ;;  %v634_v41 = vmul.f32 %v1393_v20, %v1140_v59 }
 0x3ea   :  { %v624_v37 = vpop.permute.xlu1 %623  ;;  %v706_v35 = vpack.c.bf16 %v630_v63, %v614_v46 }
 0x3eb   :  { %v628_v17 = vsel %vm156_vm0, %v624_v37, %v618_v27  ;;  %v647_v27 = vsel %vm215_vm5, %v638_v7, %v640_v32 }
 0x3ec   :  { %v629_v24 = vmul.f32 %v628_v17, %v1088_v34  ;;  %739 = vmatprep.subr.bf16.mxu0 %v706_v35  ;;  %v649_v11 = vmul.f32 %v647_v27, %v1262_v47 }
 0x3ee   :  { %v705_v30 = vpack.c.bf16 %v629_v24, %v613_v56  ;;  %v622_v19 = vpop.permute.xlu1 %621 }
 0x3ef   :  { %v625_v36 = vsel %vm156_vm0, %v622_v19, %v624_v37  ;;  %v626_v52 = vsel %vm156_vm0, %v620_v39, %v622_v19 }
 0x3f0   :  { %v631_v34 = vmul.f32 %v626_v52, %v1152_v5  ;;  %v632_v4 = vmul.f32 %v625_v36, %v1155_v6  ;;  %740 = vmatpush1.bf16.msra.mxu0 %v705_v30  ;;  %v633_v5 = vmul.f32 %v1385_v61, %v1136_v58  ;;  %v636_v58 = vmul.f32 %v1403_v14, %v1251_v23 }
 0x3f2   :  { %v707_v62 = vpack.c.bf16 %v631_v34, %v615_v12  ;;  %v642_v53 = vpop.permute.xlu1 %641  ;;  %v708_v42 = vpack.c.bf16 %v632_v4, %v616_v21  ;;  %v709_v31 = vpack.c.bf16 %v649_v11, %v633_v5 }
 0x3f3   :  { %v646_v43 = vsel %vm215_vm5, %v640_v32, %v642_v53  ;;  %v654_v32 = vpop.permute.xlu0 %653 }
 0x3f4   :  { %v650_v38 = vmul.f32 %v646_v43, %v1190_v10  ;;  %780 = vmatprep.subr.bf16.mxu1 %v708_v42  ;;  %v635_v10 = vmul.f32 %v1387_v54, %v1247_v44  ;;  %v663_v23 = vsel %vm248_vm7, %v654_v32, %v656_v28 }
 0x3f5   :  { %781 = vmatpush1.bf16.msra.mxu1 %v707_v62  ;;  %v665_v63 = vmul.f32 %v663_v23, %v1280_v8 }
 0x3f6   :  { %v644_v6 = vpop.permute.xlu1 %643  ;;  %v710_v26 = vpack.c.bf16 %v650_v38, %v634_v41 }
 0x3f7   :  { %v645_v1 = vsel %vm215_vm5, %v642_v53, %v644_v6  ;;  %v648_v47 = vsel %vm215_vm5, %v644_v6, %v638_v7  ;;  %v660_v39 = vpop.permute.xlu0 %659 }
 0x3f8   :  { %v651_v40 = vmul.f32 %v645_v1, %v1284_v25  ;;  %v652_v59 = vmul.f32 %v648_v47, %v1290_v13  ;;  %741 = vmatprep.subr.bf16.mxu0 %v710_v26  ;;  %v664_v35 = vsel %vm248_vm7, %v660_v39, %v654_v32 }
 0x3f9   :  { %742 = vmatpush1.bf16.msra.mxu0 %v709_v31  ;;  %v668_v8 = vmul.f32 %v664_v35, %v1319_v15 }
 0x3fa   :  { %v711_v61 = vpack.c.bf16 %v651_v40, %v635_v10  ;;  %v658_v20 = vpop.permute.xlu1 %657  ;;  %v712_v33 = vpack.c.bf16 %v652_v59, %v636_v58 }
 0x3fb   :  { %v662_v7 = vsel %vm248_vm7, %v656_v28, %v658_v20  ;;  %v686_v3 = vpop.permute.xlu0 %685 }
 0x3fc   :  { %782 = vmatprep.subr.bf16.mxu1 %v712_v33  ;;  %v666_v25 = vmul.f32 %v662_v7, %v1267_v50 }
 0x3fd   :  { %783 = vmatpush1.bf16.msra.mxu1 %v711_v61 }
 0x3fe   :  { %v674_v45 = vpop.permute.xlu1 %673 }
 0x3ff   :  { %v678_v44 = vsel %vm281_vm6, %v672_v16, %v674_v45  ;;  %v690_v18 = vpop.permute.xlu0 %689 }
 0x400   :  { %v682_v13 = vmul.f32 %v678_v44, %v1214_v0  ;;  %v661_v0 = vsel %vm248_vm7, %v658_v20, %v660_v39  ;;  %v820_v44 = vld [vmem:[%s1592_s7] sm:$0xff] }
 0x401   :  { %v667_v28 = vmul.f32 %v661_v0, %v1315_v2 }
 0x402   :  { %v670_v54 = vpop.permute.xlu1 %669  ;;  %v714_v14 = vpack.c.bf16 %v682_v13, %v666_v25 }
 0x403   :  { %v679_v46 = vsel %vm281_vm6, %v670_v54, %v672_v16 }
 0x404   :  { %v681_v37 = vmul.f32 %v679_v46, %v1218_v49  ;;  %743 = vmatprep.subr.bf16.mxu0 %v714_v14 }
 0x406   :  { %v713_v50 = vpack.c.bf16 %v681_v37, %v665_v63  ;;  %v676_v17 = vpop.permute.xlu1 %675 }
 0x407   :  { %v677_v56 = vsel %vm281_vm6, %v674_v45, %v676_v17  ;;  %v680_v60 = vsel %vm281_vm6, %v676_v17, %v670_v54  ;;  %v819_v54 = vld [vmem:[%s1593_s6] sm:$0xff] }
 0x408   :  { %v683_v49 = vmul.f32 %v677_v56, %v1294_v57  ;;  %v684_v24 = vmul.f32 %v680_v60, %v1298_v29  ;;  %744 = vmatpush1.bf16.msra.mxu0 %v713_v50 }
 0x40a   :  { %v715_v30 = vpack.c.bf16 %v683_v49, %v667_v28  ;;  %v688_v19 = vpop.permute.xlu1 %687  ;;  %v716_v21 = vpack.c.bf16 %v684_v24, %v668_v8 }
 0x40b   :  { %v694_v36 = vsel %vm314_vm8, %v688_v19, %v690_v18  ;;  %v695_v52 = vsel %vm314_vm8, %v686_v3, %v688_v19 }
 0x40c   :  { %v697_v27 = vmul.f32 %v1339_v55, %v695_v52  ;;  %v698_v15 = vmul.f32 %v1358_v51, %v694_v36  ;;  %784 = vmatprep.subr.bf16.mxu1 %v716_v21  ;;  %v568_v51 = vld [vmem:[%s1591_s5] sm:$0xf] }
 0x40d   :  { %785 = vmatpush1.bf16.msra.mxu1 %v715_v30 }
 0x40e   :  { %v717_v57 = vpack.c.bf16 %v697_v27, %v697_v27  ;;  %v718_v2 = vpack.c.bf16 %v698_v15, %v698_v15  ;;  %v692_v29 = vpop.permute.xlu1 %691 }
 0x40f   :  { %v693_v12 = vsel %vm314_vm8, %v690_v18, %v692_v29  ;;  %v696_v34 = vsel %vm314_vm8, %v692_v29, %v686_v3 }
 0x410   :  { %v699_v4 = vmul.f32 %v1363_v22, %v693_v12  ;;  %v700_v16 = vmul.f32 %v1353_v48, %v696_v34  ;;  %882 = vmatprep.subr.msk.bf16.mxu0 %vm393_vm4, %v718_v2  ;;  %v726_v55 = vsel %vm393_vm4, %v717_v57, 0 }
 0x411   :  { %746 = vmatpush1.bf16.msra.mxu0 %v726_v55 }
 0x412   :  { %v719_v62 = vpack.c.bf16 %v699_v4, %v699_v4  ;;  %v720_v53 = vpack.c.bf16 %v700_v16, %v700_v16 }
 0x414   :  { %883 = vmatmul.mubr.msk.bf16.vlgmr.msra.gmra.mrb[4].mxu0 %vm721_vm11, %v568_v51  ;;  %884 = vmatprep.subr.msk.bf16.mxu1 %vm393_vm4, %v720_v53  ;;  %v732_v9 = vsel %vm393_vm4, %v719_v62, 0 }
 0x415   :  { %787 = vmatpush1.bf16.msra.mxu1 %v732_v9 }
 0x418   :  { %885 = vmatmul.mubr.msk.bf16.vlgmr.msra.gmra.mrb[4].mxu1 %vm721_vm11, %v568_v51 }
 0x4e7   :  { %v771_v48 = vpop.f32.mrb[4].mxu0 }
 0x4e8   :  { %v773_v22 = vpop.f32.mrb[5].mxu0 }
 0x4e9   :  { %v821_v42 = vadd.f32 %v773_v22, %v771_v48  ;;  %v775_v11 = vpop.f32.mrb[6].mxu0 }
 0x4ea   :  { %v776_v43 = vpop.f32.mrb[7].mxu0 }
 0x4eb   :  { %v812_v38 = vpop.f32.mrb[4].mxu1 }
 0x4ec   :  { %v822_v41 = vadd.f32 %v821_v42, %v812_v38  ;;  %v814_v5 = vpop.f32.mrb[5].mxu1 }
 0x4ed   :  { %v816_v6 = vpop.f32.mrb[6].mxu1 }
 0x4ee   :  { %v817_v26 = vpop.f32.mrb[7].mxu1  ;;  %v823_v31 = vadd.f32 %v822_v41, %v814_v5 }
 0x4f0   :  { %824 = vadd.xlane.f32.xlu0 %v823_v31 }
 0x57d   :  { %v825_v1 = vpop.xlane.xlu0 %824 }
 0x57e   :  { %v826_v47 = vmul.f32 0.001953125, %v825_v1 }
 0x580   :  { %v827_v32 = vsub.f32 %v771_v48, %v826_v47  ;;  %v828_v10 = vsub.f32 %v773_v22, %v826_v47  ;;  %v829_v40 = vsub.f32 %v812_v38, %v826_v47  ;;  %v830_v59 = vsub.f32 %v814_v5, %v826_v47 }
 0x582   :  { %v831_v58 = vmul.f32 %v827_v32, %v827_v32  ;;  %v832_v61 = vmul.f32 %v828_v10, %v828_v10  ;;  %v833_v20 = vmul.f32 %v829_v40, %v829_v40  ;;  %v834_v7 = vmul.f32 %v830_v59, %v830_v59 }
 0x584   :  { %v835_v33 = vadd.f32 %v832_v61, %v831_v58 }
 0x586   :  { %v836_v39 = vadd.f32 %v835_v33, %v833_v20 }
 0x588   :  { %v837_v45 = vadd.f32 %v836_v39, %v834_v7 }
 0x58a   :  { %838 = vadd.xlane.f32.xlu1 %v837_v45 }
 0x59b   :  { %855 = vperm.xlu1 %896, %v820_v44  }
 0x617   :  { %v839_v25 = vpop.xlane.xlu1 %838 }
 0x618   :  { %v840_v13 = vmul.f32 0.001953125, %v839_v25 }
 0x61a   :  { %v841_v23 = vadd.f32 1e-05, %v840_v13 }
 0x61b   :  { %v856_v50 = vpop.permute.xlu1 %855 }
 0x61c   :  { %901 = vrsqrt.f32 %v841_v23 }
 0x626   :  { %v902_v14 = vpop.eup %901 }
 0x627   :  { %v843_v46 = vmul.f32 %v902_v14, %v819_v54 }
 0x629   :  { %846 = vperm.xlu0 %895, %v843_v46  }
 0x6a8   :  { %v847_v63 = vpop.permute.xlu0 %846 }
 0x6a9   :  { %v849_v3 = vmul.f32 %v847_v63, %v827_v32  ;;  %v850_v37 = vmul.f32 %v847_v63, %v828_v10  ;;  %v851_v35 = vmul.f32 %v847_v63, %v829_v40  ;;  %v852_v0 = vmul.f32 %v847_v63, %v830_v59 }
 0x6ab   :  { %v858_v17 = vadd.f32 %v856_v50, %v849_v3  ;;  %v859_v56 = vadd.f32 %v856_v50, %v850_v37  ;;  %v860_v60 = vadd.f32 %v856_v50, %v851_v35  ;;  %v861_v8 = vadd.f32 %v856_v50, %v852_v0 }
 0x6ad   :  { %v862_v28 = vmax.f32 %v858_v17, 0.0  ;;  %v863_v49 = vmax.f32 %v859_v56, 0.0  ;;  %v864_v24 = vmax.f32 %v860_v60, 0.0  ;;  %v865_v18 = vmax.f32 %v861_v8, 0.0 }
 0x6af   :  { %866 = vst [vmem:[%s1594_s8] sm:$0xff] %v862_v28  ;;  %867 = vst [vmem:[%s1594_s8 + $0x8] sm:$0xff] %v863_v49 }
 0x6b0   :  { %868 = vst [vmem:[%s1594_s8 + $0x10] sm:$0xff] %v864_v24  ;;  %869 = vst [vmem:[%s1594_s8 + $0x18] sm:$0xff] %v865_v18 }

</bundles_post_ra>
